<compile_context>
chip_gen: v5e
topology: v5e:2x2
jax: 0.10.0
libtpu: 0.0.40
codegen_flags: <defaults>
</compile_context>

<pallas_src>
import numpy as np
import jax
import jax.numpy as jnp
from jax.experimental import pallas as pl
from jax.experimental.pallas import tpu as pltpu


def _round_up(x: int, m: int) -> int:
    return -(-x // m) * m


def _interp_matrix_np(out_size: int, in_size: int) -> np.ndarray:
    """1-D bilinear interpolation matrix (align_corners=True), float64."""
    if out_size == 1 or in_size == 1:
        w = np.zeros((out_size, in_size), dtype=np.float64)
        w[:, 0] = 1.0
        return w
    src = np.arange(out_size, dtype=np.float64) * (in_size - 1) / (out_size - 1)
    lo = np.clip(np.floor(src).astype(np.int64), 0, in_size - 2)
    frac = src - lo
    rows = np.arange(out_size)
    w = np.zeros((out_size, in_size), dtype=np.float64)
    w[rows, lo] += 1.0 - frac
    w[rows, lo + 1] += frac
    return w


def _vmem_capacity_bytes() -> int:
    """Per-core VMEM capacity; conservative fallback (v7x: 64 MiB)."""
    try:
        return int(pltpu.get_tpu_info().vmem_capacity_bytes)
    except Exception:  # pragma: no cover - older/newer API shape
        return 64 * 1024 * 1024


def _vmem_limit_bytes(blk, h, w, ho, wo, vmem_cap) -> int:
    """Scoped-VMEM request derived from actual padded buffer sizes."""
    def tile(r, c):  # f32 VMEM footprint of an (r, c) tile (8x128 padding)
        return _round_up(r, 8) * _round_up(c, 128) * 4

    in_buf = blk * tile(h, w)            # one input pipeline buffer
    out_buf = blk * tile(ho, wo)         # one output pipeline buffer
    weights = 2 * (tile(w, wo) + tile(ho, h))
    # transients: broadcast weights, width-pass intermediate, f32 result
    trans = blk * (tile(w, wo) + tile(h, wo) + tile(ho, h) + tile(ho, wo))
    need = 2 * in_buf + 2 * out_buf + weights + trans + (1 << 20)
    # 2x margin, but never above 48 MiB / 3/4 of physical VMEM (v7x headroom)
    return int(min(max(2 * need, 16 << 20), (3 * vmem_cap) // 4, 48 << 20))


def _resize_kernel(x_ref, wxt_ref, wy_ref, o_ref):
    # x_ref : (blk, H, W)       block of planes
    # wxt_ref: (W, W_out)       resident width-interp matrix (transposed)
    # wy_ref : (H_out, H)       resident height-interp matrix
    # o_ref : (blk, H_out, W_out)
    blk, h, w = x_ref.shape
    ho = wy_ref.shape[0]
    wo = wxt_ref.shape[1]

    xb = x_ref[...].astype(jnp.float32)                       # (blk, H, W)

    # Width pass: t[b, h, p] = sum_w x[b, h, w] * WxT[w, p]
    wxt_b = jnp.broadcast_to(wxt_ref[...], (blk, w, wo))      # (blk, W, Wout)
    t = jax.lax.dot_general(
        xb, wxt_b,
        dimension_numbers=(((2,), (1,)), ((0,), (0,))),
        preferred_element_type=jnp.float32)                   # (blk, H, Wout)

    # Height pass: out[b, o, p] = sum_h Wy[o, h] * t[b, h, p]
    wy_b = jnp.broadcast_to(wy_ref[...], (blk, ho, h))        # (blk, Hout, H)
    out = jax.lax.dot_general(
        wy_b, t,
        dimension_numbers=(((2,), (1,)), ((0,), (0,))),
        preferred_element_type=jnp.float32)                   # (blk, Hout, Wout)

    o_ref[...] = out.astype(o_ref.dtype)


@jax.jit
def bilinear_upsample_x2(x: jax.Array) -> jax.Array:
    """x: (N, C, H, W) -> (N, C, 2H, 2W), matching
    F.interpolate(scale_factor=2, mode='bilinear', align_corners=True)."""
    n, c, h, w = x.shape
    ho, wo = 2 * h, 2 * w
    nc = n * c

    # Interp matrices built in float64 then cast; under jit these are
    # device-resident compile-time constants (no per-call transfer).
    wy = jnp.asarray(_interp_matrix_np(ho, h), dtype=jnp.float32)      # (Hout, H)
    wxt = jnp.asarray(_interp_matrix_np(wo, w).T, dtype=jnp.float32)   # (W, Wout)

    # Generation-aware plane-block size: one block when N*C is small (no
    # pointless split on 1-TC v5e/v6e), capped by VMEM capacity (128 on v7x's
    # 64 MiB, 256 on v5e/v6e's 128 MiB).  MXU M-fill comes from blk*H rows,
    # so even modest blocks keep the MXU busy.
    vmem_cap = _vmem_capacity_bytes()
    cap = 256 if vmem_cap >= 96 * 1024 * 1024 else 128
    nc8 = _round_up(nc, 8)                 # sublane multiple
    blk = min(nc8, cap)
    grid = pl.cdiv(nc8, blk)

    x3 = x.reshape(nc, h, w)               # free view (NCHW contiguous)
    if nc8 != nc:
        # Only the remainder-to-8 is padded; a ragged *last block* in the
        # multi-step regime is handled by Pallas boundary masking instead.
        x3 = jnp.pad(x3, ((0, nc8 - nc), (0, 0), (0, 0)))

    out3 = pl.pallas_call(
        _resize_kernel,
        out_shape=jax.ShapeDtypeStruct((nc8, ho, wo), x.dtype),
        grid_spec=pltpu.PrefetchScalarGridSpec(
            num_scalar_prefetch=0,
            grid=(grid,),
            in_specs=[
                pl.BlockSpec((blk, h, w), lambda i: (i, 0, 0)),
                pl.BlockSpec((w, wo), lambda i: (0, 0)),   # resident WxT (3.2 KB)
                pl.BlockSpec((ho, h), lambda i: (0, 0)),   # resident Wy  (3.2 KB)
            ],
            out_specs=pl.BlockSpec((blk, ho, wo), lambda i: (i, 0, 0)),
        ),
        compiler_params=pltpu.CompilerParams(
            dimension_semantics=("parallel",),   # shards across TCs on v7x when grid>1
            vmem_limit_bytes=_vmem_limit_bytes(blk, h, w, ho, wo, vmem_cap),
        ),
    )(x3, wxt, wy)

    return out3[:nc].reshape(n, c, ho, wo)


if __name__ == "__main__":
    key = jax.random.PRNGKey(0)
    # Small shape consistent with the module's example input (1, 3, 20, 20);
    # batch=2 to exercise the multi-plane path.
    x = jax.random.normal(key, (2, 3, 20, 20), dtype=jnp.float32)

    out = bilinear_upsample_x2(x)
    out = jax.block_until_ready(out)

    # Reference: separable formulation in plain JAX with the same f32 weights.
    wy_ref = jnp.asarray(_interp_matrix_np(40, 20), dtype=jnp.float32)
    wx_ref = jnp.asarray(_interp_matrix_np(40, 20), dtype=jnp.float32)
    ref = jnp.einsum("oh,nchw,pw->ncop", wy_ref, x, wx_ref)

    assert out.shape == (2, 3, 40, 40), out.shape
    assert jnp.allclose(out, ref, atol=1e-5, rtol=1e-5)

    print("KERNEL_OK")
</pallas_src>

<mosaic_0001>
module attributes {stable_mosaic.version = 11 : i64} {
  func.func @_resize_kernel(%arg0: i32, %arg1: memref<8x20x20xf32, #tpu.memory_space<vmem>>, %arg2: memref<20x40xf32, #tpu.memory_space<vmem>>, %arg3: memref<40x20xf32, #tpu.memory_space<vmem>>, %arg4: memref<8x40x40xf32, #tpu.memory_space<vmem>>) attributes {dimension_semantics = [#tpu.dimension_semantics<parallel>], iteration_bounds = array<i64: 1>, scalar_prefetch = 0 : i64, scratch_operands = 0 : i64, tpu.core_type = #tpu.core_type<tc>, window_params = [{transform_indices = @transform_0, window_bounds = array<i64: 8, 20, 20>}, {pipeline_mode = #tpu.pipeline_mode<synchronous>, transform_indices = @transform_1, window_bounds = array<i64: 20, 40>}, {pipeline_mode = #tpu.pipeline_mode<synchronous>, transform_indices = @transform_2, window_bounds = array<i64: 40, 20>}, {transform_indices = @transform_3, window_bounds = array<i64: 8, 40, 40>}]} {
    %c0 = arith.constant 0 : index
    %c0_0 = arith.constant 0 : index
    %c0_1 = arith.constant 0 : index
    %0 = vector.load %arg1[%c0, %c0_0, %c0_1] : memref<8x20x20xf32, #tpu.memory_space<vmem>>, vector<8x20x20xf32>
    %c0_2 = arith.constant 0 : index
    %c0_3 = arith.constant 0 : index
    %1 = vector.load %arg2[%c0_2, %c0_3] : memref<20x40xf32, #tpu.memory_space<vmem>>, vector<20x40xf32>
    %2 = vector.shape_cast %1 : vector<20x40xf32> to vector<1x20x40xf32>
    %3 = vector.broadcast %2 : vector<1x20x40xf32> to vector<8x20x40xf32>
    %cst = arith.constant dense<0.000000e+00> : vector<8x20x40xf32>
    %4 = tpu.matmul %0, %3, %cst {dimension_numbers = #tpu.dot_dimension_numbers<[2], [1], [1], [2], [0, 0, 0, 1, 1, 2], [0], [0]>} : vector<8x20x20xf32>, vector<8x20x40xf32>, vector<8x20x40xf32> -> vector<8x20x40xf32>
    %c0_4 = arith.constant 0 : index
    %c0_5 = arith.constant 0 : index
    %5 = vector.load %arg3[%c0_4, %c0_5] : memref<40x20xf32, #tpu.memory_space<vmem>>, vector<40x20xf32>
    %6 = vector.shape_cast %5 : vector<40x20xf32> to vector<1x40x20xf32>
    %7 = vector.broadcast %6 : vector<1x40x20xf32> to vector<8x40x20xf32>
    %cst_6 = arith.constant dense<0.000000e+00> : vector<8x40x40xf32>
    %8 = tpu.matmul %7, %4, %cst_6 {dimension_numbers = #tpu.dot_dimension_numbers<[2], [1], [1], [2], [0, 0, 0, 1, 1, 2], [0], [0]>} : vector<8x40x20xf32>, vector<8x20x40xf32>, vector<8x40x40xf32> -> vector<8x40x40xf32>
    %c0_7 = arith.constant 0 : index
    %c0_8 = arith.constant 0 : index
    %c0_9 = arith.constant 0 : index
    %9 = vector.load %arg4[%c0_7, %c0_8, %c0_9] : memref<8x40x40xf32, #tpu.memory_space<vmem>>, vector<8x40x40xf32>
    tpu.vector_store %arg4[%c0_7, %c0_8, %c0_9], %8 {strides = array<i32>} : memref<8x40x40xf32, #tpu.memory_space<vmem>>, vector<8x40x40xf32>,
    return
  }
  func.func @transform_0(%arg0: i32) -> (i32, i32, i32) {
    %c0_i32 = arith.constant 0 : i32
    %c0_i32_0 = arith.constant 0 : i32
    %c0_i32_1 = arith.constant 0 : i32
    return %arg0, %c0_i32, %c0_i32_0 : i32, i32, i32
  }
  func.func @transform_1(%arg0: i32) -> (i32, i32) {
    %c0_i32 = arith.constant 0 : i32
    %c0_i32_0 = arith.constant 0 : i32
    %c0_i32_1 = arith.constant 0 : i32
    return %c0_i32, %c0_i32_0 : i32, i32
  }
  func.func @transform_2(%arg0: i32) -> (i32, i32) {
    %c0_i32 = arith.constant 0 : i32
    %c0_i32_0 = arith.constant 0 : i32
    %c0_i32_1 = arith.constant 0 : i32
    return %c0_i32, %c0_i32_0 : i32, i32
  }
  func.func @transform_3(%arg0: i32) -> (i32, i32, i32) {
    %c0_i32 = arith.constant 0 : i32
    %c0_i32_0 = arith.constant 0 : i32
    %c0_i32_1 = arith.constant 0 : i32
    return %arg0, %c0_i32, %c0_i32_0 : i32, i32, i32
  }
}

</mosaic_0001>

<bundles_post_ra>
// kernel: bilinear_upsample_x2.1
= control target key start
LH: loop header
LB: loop body
LE: loop exit
PB: predicated region body
PF: predicated region fallthrough
CT: control target
= control target key end

     0   :  { %vm51_vm0 = vcmask 1043456   ;;  %vm41_vm1 = vcmask 162816   ;;  %vm626_vm2 = vcmask 326656   ;;  %s1107_s1 = inlined_call_operand.vmem [shape: f32[20,40], index: 1, kind: input, shape index: {}]   ;;  %s1108_s0 = inlined_call_operand.vmem [shape: f32[8,20,20], index: 0, kind: input, shape index: {}]   ;;  %s1109_s2 = inlined_call_operand.vmem [shape: f32[40,20], index: 2, kind: input, shape index: {}]   ;;  %s1110_s3 = inlined_call_operand.vmem [shape: f32[8,40,40], index: 3, kind: output, shape index: {}]  }
   0x1   :  { %v40_v0 = vld [vmem:[%s1107_s1 + $0x10] sm:$0xf]  ;;  %v39_v1 = vld [vmem:[%s1107_s1 + $0x8] sm:$0xff]  ;;  %v38_v2 = vld [vmem:[%s1107_s1] sm:$0xff] }
   0x2   :  { %671 = vmatpush.msk.msra.mxu0 %vm51_vm0, %v40_v0  ;;  %675 = vmatpush.msk.msra.mxu1 %vm51_vm0, %v40_v0  ;;  %v14_v3 = vld [vmem:[%s1108_s0] sm:$0xff]  ;;  %v17_v4 = vld [vmem:[%s1108_s0 + $0x18] sm:$0xff]  ;;  %v20_v5 = vld [vmem:[%s1108_s0 + $0x30] sm:$0xff] }
   0x3   :  { %679 = vmatpush.msk.msra.mxu2 %vm51_vm0, %v40_v0  ;;  %683 = vmatpush.msk.msra.mxu3 %vm51_vm0, %v40_v0  ;;  %v23_v6 = vld [vmem:[%s1108_s0 + $0x48] sm:$0xff]  ;;  %v18_v8 = vld [vmem:[%s1108_s0 + $0x20] sm:$0xff]  ;;  %v21_v9 = vld [vmem:[%s1108_s0 + $0x38] sm:$0xff] }
   0x4   :  { %69 = vmatpush.msra.mxu0 %v39_v1  ;;  %104 = vmatpush.msra.mxu1 %v39_v1  ;;  %v15_v7 = vld [vmem:[%s1108_s0 + $0x8] sm:$0xff]  ;;  %v24_v10 = vld [vmem:[%s1108_s0 + $0x50] sm:$0xff]  ;;  %v22_v13 = vld [vmem:[%s1108_s0 + $0x40] sm:$0xf] }
   0x5   :  { %139 = vmatpush.msra.mxu2 %v39_v1  ;;  %174 = vmatpush.msra.mxu3 %v39_v1  ;;  %v16_v11 = vld [vmem:[%s1108_s0 + $0x10] sm:$0xf]  ;;  %v19_v12 = vld [vmem:[%s1108_s0 + $0x28] sm:$0xf]  ;;  %v25_v14 = vld [vmem:[%s1108_s0 + $0x58] sm:$0xf] }
   0x6   :  { %70 = vmatpush.msra.mxu0 %v38_v2  ;;  %105 = vmatpush.msra.mxu1 %v38_v2  ;;  %v26_v15 = vld [vmem:[%s1108_s0 + $0x60] sm:$0xff]  ;;  %v29_v16 = vld [vmem:[%s1108_s0 + $0x78] sm:$0xff]  ;;  %v32_v17 = vld [vmem:[%s1108_s0 + $0x90] sm:$0xff] }
   0x7   :  { %140 = vmatpush.msra.mxu2 %v38_v2  ;;  %175 = vmatpush.msra.mxu3 %v38_v2  ;;  %v35_v18 = vld [vmem:[%s1108_s0 + $0xa8] sm:$0xff]  ;;  %v30_v20 = vld [vmem:[%s1108_s0 + $0x80] sm:$0xff]  ;;  %v33_v21 = vld [vmem:[%s1108_s0 + $0x98] sm:$0xff] }
   0x8   :  { %672 = vmatmul.msk.f32.vlgmr.msra.gmra.mxu0 %vm41_vm1, %v14_v3  ;;  %676 = vmatmul.msk.f32.vlgmr.msra.gmra.mxu1 %vm41_vm1, %v17_v4  ;;  %v27_v19 = vld [vmem:[%s1108_s0 + $0x68] sm:$0xff]  ;;  %v36_v22 = vld [vmem:[%s1108_s0 + $0xb0] sm:$0xff]  ;;  %v34_v25 = vld [vmem:[%s1108_s0 + $0xa0] sm:$0xf] }
   0x9   :  { %680 = vmatmul.msk.f32.vlgmr.msra.gmra.mxu2 %vm41_vm1, %v20_v5  ;;  %684 = vmatmul.msk.f32.vlgmr.msra.gmra.mxu3 %vm41_vm1, %v23_v6  ;;  %v28_v23 = vld [vmem:[%s1108_s0 + $0x70] sm:$0xf]  ;;  %v31_v24 = vld [vmem:[%s1108_s0 + $0x88] sm:$0xf]  ;;  %v37_v26 = vld [vmem:[%s1108_s0 + $0xb8] sm:$0xf] }
   0xa   :  { %687 = vmatpush.msk.msrb.mxu0 %vm51_vm0, %v40_v0  ;;  %691 = vmatpush.msk.msrb.mxu1 %vm51_vm0, %v40_v0  ;;  %v326_v37 = vld [vmem:[%s1109_s2] sm:$0xff]  ;;  %v327_v42 = vld [vmem:[%s1109_s2 + $0x8] sm:$0xff]  ;;  %v328_v47 = vld [vmem:[%s1109_s2 + $0x10] sm:$0xff] }
   0xb   :  { %695 = vmatpush.msk.msrb.mxu2 %vm51_vm0, %v40_v0  ;;  %699 = vmatpush.msk.msrb.mxu3 %vm51_vm0, %v40_v0  ;;  %v329_v52 = vld [vmem:[%s1109_s2 + $0x18] sm:$0xff]  ;;  %v330_v55 = vld [vmem:[%s1109_s2 + $0x20] sm:$0xff] }
   0xc   :  { %209 = vmatpush.msrb.mxu0 %v39_v1  ;;  %244 = vmatpush.msrb.mxu1 %v39_v1 }
   0xd   :  { %279 = vmatpush.msrb.mxu2 %v39_v1  ;;  %314 = vmatpush.msrb.mxu3 %v39_v1 }
   0xe   :  { %210 = vmatpush.msrb.mxu0 %v38_v2  ;;  %245 = vmatpush.msrb.mxu1 %v38_v2 }
   0xf   :  { %280 = vmatpush.msrb.mxu2 %v38_v2  ;;  %315 = vmatpush.msrb.mxu3 %v38_v2 }
  0x10   :  { %673 = vmatmul.msk.f32.gmra.mxu0 %vm41_vm1, %v15_v7  ;;  %677 = vmatmul.msk.f32.gmra.mxu1 %vm41_vm1, %v18_v8 }
  0x11   :  { %681 = vmatmul.msk.f32.gmra.mxu2 %vm41_vm1, %v21_v9  ;;  %685 = vmatmul.msk.f32.gmra.mxu3 %vm41_vm1, %v24_v10 }
  0x18   :  { %674 = vmatmul.msk.f32.gmra.mxu0 %vm41_vm1, %v16_v11  ;;  %678 = vmatmul.msk.f32.gmra.mxu1 %vm41_vm1, %v19_v12 }
  0x19   :  { %682 = vmatmul.msk.f32.gmra.mxu2 %vm41_vm1, %v22_v13  ;;  %686 = vmatmul.msk.f32.gmra.mxu3 %vm41_vm1, %v25_v14 }
  0x20   :  { %688 = vmatmul.msk.f32.vlgmr.msrb.gmra.mxu0 %vm41_vm1, %v26_v15  ;;  %692 = vmatmul.msk.f32.vlgmr.msrb.gmra.mxu1 %vm41_vm1, %v29_v16 }
  0x21   :  { %696 = vmatmul.msk.f32.vlgmr.msrb.gmra.mxu2 %vm41_vm1, %v32_v17  ;;  %700 = vmatmul.msk.f32.vlgmr.msrb.gmra.mxu3 %vm41_vm1, %v35_v18 }
  0x28   :  { %689 = vmatmul.msk.f32.gmra.mxu0 %vm41_vm1, %v27_v19  ;;  %693 = vmatmul.msk.f32.gmra.mxu1 %vm41_vm1, %v30_v20 }
  0x29   :  { %697 = vmatmul.msk.f32.gmra.mxu2 %vm41_vm1, %v33_v21  ;;  %701 = vmatmul.msk.f32.gmra.mxu3 %vm41_vm1, %v36_v22 }
  0x30   :  { %690 = vmatmul.msk.f32.gmra.mxu0 %vm41_vm1, %v28_v23  ;;  %694 = vmatmul.msk.f32.gmra.mxu1 %vm41_vm1, %v31_v24 }
  0x31   :  { %698 = vmatmul.msk.f32.gmra.mxu2 %vm41_vm1, %v34_v25  ;;  %702 = vmatmul.msk.f32.gmra.mxu3 %vm41_vm1, %v37_v26 }
  0x85   :  { %v72_v27 = vpop.f32.mrf.mxu0  ;;  %v107_v28 = vpop.f32.mrf.mxu1 }
  0x8c   :  { %v142_v29 = vpop.f32.mrf.mxu2  ;;  %v177_v30 = vpop.f32.mrf.mxu3 }
  0x8d   :  { %v75_v31 = vpop.f32.mrf.mxu0  ;;  %v110_v32 = vpop.f32.mrf.mxu1 }
  0x94   :  { %v145_v33 = vpop.f32.mrf.mxu2  ;;  %v180_v34 = vpop.f32.mrf.mxu3 }
  0x95   :  { %v78_v35 = vpop.f32.mrf.mxu0  ;;  %v113_v36 = vpop.f32.mrf.mxu1 }
  0x96   :  { %703 = vmatpush.msk.msra.mxu0 %vm51_vm0, %v78_v35  ;;  %709 = vmatpush.msk.msra.mxu1 %vm51_vm0, %v113_v36 }
  0x98   :  { %363 = vmatpush.msra.mxu0 %v75_v31  ;;  %398 = vmatpush.msra.mxu1 %v110_v32 }
  0x9a   :  { %364 = vmatpush.msra.mxu0 %v72_v27  ;;  %399 = vmatpush.msra.mxu1 %v107_v28 }
  0x9b   :  { %704 = vmatmul.msk.f32.vlgmr.msra.gmra.mxu0 %vm41_vm1, %v326_v37  ;;  %710 = vmatmul.msk.f32.vlgmr.msra.gmra.mxu1 %vm41_vm1, %v326_v37 }
  0x9c   :  { %v148_v38 = vpop.f32.mrf.mxu2  ;;  %v183_v39 = vpop.f32.mrf.mxu3 }
  0x9d   :  { %715 = vmatpush.msk.msra.mxu2 %vm51_vm0, %v148_v38  ;;  %721 = vmatpush.msk.msra.mxu3 %vm51_vm0, %v183_v39  ;;  %v212_v40 = vpop.f32.mrf.mxu0  ;;  %v247_v41 = vpop.f32.mrf.mxu1 }
  0x9f   :  { %433 = vmatpush.msra.mxu2 %v145_v33  ;;  %468 = vmatpush.msra.mxu3 %v180_v34 }
  0xa1   :  { %434 = vmatpush.msra.mxu2 %v142_v29  ;;  %469 = vmatpush.msra.mxu3 %v177_v30 }
  0xa2   :  { %716 = vmatmul.msk.f32.vlgmr.msra.gmra.mxu2 %vm41_vm1, %v326_v37  ;;  %722 = vmatmul.msk.f32.vlgmr.msra.gmra.mxu3 %vm41_vm1, %v326_v37 }
  0xa3   :  { %705 = vmatmul.msk.f32.gmra.mxu0 %vm41_vm1, %v327_v42  ;;  %711 = vmatmul.msk.f32.gmra.mxu1 %vm41_vm1, %v327_v42 }
  0xa4   :  { %v282_v43 = vpop.f32.mrf.mxu2  ;;  %v317_v44 = vpop.f32.mrf.mxu3 }
  0xa5   :  { %v215_v45 = vpop.f32.mrf.mxu0  ;;  %v250_v46 = vpop.f32.mrf.mxu1 }
  0xaa   :  { %717 = vmatmul.msk.f32.gmra.mxu2 %vm41_vm1, %v327_v42  ;;  %723 = vmatmul.msk.f32.gmra.mxu3 %vm41_vm1, %v327_v42 }
  0xab   :  { %706 = vmatmul.msk.f32.gmra.mxu0 %vm41_vm1, %v328_v47  ;;  %712 = vmatmul.msk.f32.gmra.mxu1 %vm41_vm1, %v328_v47 }
  0xac   :  { %v285_v48 = vpop.f32.mrf.mxu2  ;;  %v320_v49 = vpop.f32.mrf.mxu3 }
  0xad   :  { %v218_v50 = vpop.f32.mrf.mxu0  ;;  %v253_v51 = vpop.f32.mrf.mxu1 }
  0xae   :  { %727 = vmatpush.msk.msrb.mxu0 %vm51_vm0, %v218_v50  ;;  %733 = vmatpush.msk.msrb.mxu1 %vm51_vm0, %v253_v51 }
  0xb0   :  { %503 = vmatpush.msrb.mxu0 %v215_v45  ;;  %538 = vmatpush.msrb.mxu1 %v250_v46 }
  0xb2   :  { %504 = vmatpush.msrb.mxu0 %v212_v40  ;;  %539 = vmatpush.msrb.mxu1 %v247_v41 }
  0xb3   :  { %718 = vmatmul.msk.f32.gmra.mxu2 %vm41_vm1, %v328_v47  ;;  %724 = vmatmul.msk.f32.gmra.mxu3 %vm41_vm1, %v328_v47 }
  0xb4   :  { %v288_v53 = vpop.f32.mrf.mxu2  ;;  %v323_v54 = vpop.f32.mrf.mxu3  ;;  %707 = vmatmul.msk.f32.gmra.mxu0 %vm41_vm1, %v329_v52  ;;  %713 = vmatmul.msk.f32.gmra.mxu1 %vm41_vm1, %v329_v52 }
  0xb5   :  { %739 = vmatpush.msk.msrb.mxu2 %vm51_vm0, %v288_v53  ;;  %745 = vmatpush.msk.msrb.mxu3 %vm51_vm0, %v323_v54 }
  0xb7   :  { %573 = vmatpush.msrb.mxu2 %v285_v48  ;;  %608 = vmatpush.msrb.mxu3 %v320_v49 }
  0xb9   :  { %574 = vmatpush.msrb.mxu2 %v282_v43  ;;  %609 = vmatpush.msrb.mxu3 %v317_v44 }
  0xbb   :  { %719 = vmatmul.msk.f32.gmra.mxu2 %vm41_vm1, %v329_v52  ;;  %725 = vmatmul.msk.f32.gmra.mxu3 %vm41_vm1, %v329_v52 }
  0xbc   :  { %708 = vmatmul.msk.f32.gmra.mxu0 %vm41_vm1, %v330_v55  ;;  %714 = vmatmul.msk.f32.gmra.mxu1 %vm41_vm1, %v330_v55 }
  0xc3   :  { %720 = vmatmul.msk.f32.gmra.mxu2 %vm41_vm1, %v330_v55  ;;  %726 = vmatmul.msk.f32.gmra.mxu3 %vm41_vm1, %v330_v55 }
  0xc4   :  { %728 = vmatmul.msk.f32.vlgmr.msrb.gmra.mxu0 %vm41_vm1, %v326_v37  ;;  %734 = vmatmul.msk.f32.vlgmr.msrb.gmra.mxu1 %vm41_vm1, %v326_v37 }
  0xcb   :  { %740 = vmatmul.msk.f32.vlgmr.msrb.gmra.mxu2 %vm41_vm1, %v326_v37  ;;  %746 = vmatmul.msk.f32.vlgmr.msrb.gmra.mxu3 %vm41_vm1, %v326_v37 }
  0xcc   :  { %729 = vmatmul.msk.f32.gmra.mxu0 %vm41_vm1, %v327_v42  ;;  %735 = vmatmul.msk.f32.gmra.mxu1 %vm41_vm1, %v327_v42 }
  0xd3   :  { %741 = vmatmul.msk.f32.gmra.mxu2 %vm41_vm1, %v327_v42  ;;  %747 = vmatmul.msk.f32.gmra.mxu3 %vm41_vm1, %v327_v42 }
  0xd4   :  { %730 = vmatmul.msk.f32.gmra.mxu0 %vm41_vm1, %v328_v47  ;;  %736 = vmatmul.msk.f32.gmra.mxu1 %vm41_vm1, %v328_v47 }
  0xdb   :  { %742 = vmatmul.msk.f32.gmra.mxu2 %vm41_vm1, %v328_v47  ;;  %748 = vmatmul.msk.f32.gmra.mxu3 %vm41_vm1, %v328_v47 }
  0xdc   :  { %731 = vmatmul.msk.f32.gmra.mxu0 %vm41_vm1, %v329_v52  ;;  %737 = vmatmul.msk.f32.gmra.mxu1 %vm41_vm1, %v329_v52 }
  0xe3   :  { %743 = vmatmul.msk.f32.gmra.mxu2 %vm41_vm1, %v329_v52  ;;  %749 = vmatmul.msk.f32.gmra.mxu3 %vm41_vm1, %v329_v52 }
  0xe4   :  { %732 = vmatmul.msk.f32.gmra.mxu0 %vm41_vm1, %v330_v55  ;;  %738 = vmatmul.msk.f32.gmra.mxu1 %vm41_vm1, %v330_v55 }
  0xeb   :  { %744 = vmatmul.msk.f32.gmra.mxu2 %vm41_vm1, %v330_v55  ;;  %750 = vmatmul.msk.f32.gmra.mxu3 %vm41_vm1, %v330_v55 }
 0x118   :  { %v366_v56 = vpop.f32.mrf.mxu0  ;;  %v401_v57 = vpop.f32.mrf.mxu1 }
 0x119   :  { %627 = vst.msk [vmem:[%s1110_s3] sm:$0xff] %vm626_vm2, %v366_v56 }
 0x11a   :  { %632 = vst.msk [vmem:[%s1110_s3 + $0x28] sm:$0xff] %vm626_vm2, %v401_v57 }
 0x120   :  { %v369_v58 = vpop.f32.mrf.mxu0  ;;  %v404_v59 = vpop.f32.mrf.mxu1 }
 0x121   :  { %628 = vst.msk [vmem:[%s1110_s3 + $0x8] sm:$0xff] %vm626_vm2, %v369_v58 }
 0x122   :  { %633 = vst.msk [vmem:[%s1110_s3 + $0x30] sm:$0xff] %vm626_vm2, %v404_v59 }
 0x125   :  { %v436_v60 = vpop.f32.mrf.mxu2  ;;  %v471_v61 = vpop.f32.mrf.mxu3 }
 0x126   :  { %637 = vst.msk [vmem:[%s1110_s3 + $0x50] sm:$0xff] %vm626_vm2, %v436_v60 }
 0x127   :  { %642 = vst.msk [vmem:[%s1110_s3 + $0x78] sm:$0xff] %vm626_vm2, %v471_v61 }
 0x128   :  { %v372_v62 = vpop.f32.mrf.mxu0  ;;  %v407_v63 = vpop.f32.mrf.mxu1 }
 0x129   :  { %629 = vst.msk [vmem:[%s1110_s3 + $0x10] sm:$0xff] %vm626_vm2, %v372_v62 }
 0x12a   :  { %634 = vst.msk [vmem:[%s1110_s3 + $0x38] sm:$0xff] %vm626_vm2, %v407_v63 }
 0x12d   :  { %v439_v0 = vpop.f32.mrf.mxu2  ;;  %v474_v1 = vpop.f32.mrf.mxu3 }
 0x12e   :  { %638 = vst.msk [vmem:[%s1110_s3 + $0x58] sm:$0xff] %vm626_vm2, %v439_v0 }
 0x12f   :  { %643 = vst.msk [vmem:[%s1110_s3 + $0x80] sm:$0xff] %vm626_vm2, %v474_v1 }
 0x131   :  { %v375_v2 = vpop.f32.mrf.mxu0  ;;  %v410_v3 = vpop.f32.mrf.mxu1 }
 0x132   :  { %630 = vst.msk [vmem:[%s1110_s3 + $0x18] sm:$0xff] %vm626_vm2, %v375_v2 }
 0x133   :  { %635 = vst.msk [vmem:[%s1110_s3 + $0x40] sm:$0xff] %vm626_vm2, %v410_v3 }
 0x136   :  { %v442_v4 = vpop.f32.mrf.mxu2  ;;  %v477_v5 = vpop.f32.mrf.mxu3 }
 0x137   :  { %639 = vst.msk [vmem:[%s1110_s3 + $0x60] sm:$0xff] %vm626_vm2, %v442_v4 }
 0x138   :  { %644 = vst.msk [vmem:[%s1110_s3 + $0x88] sm:$0xff] %vm626_vm2, %v477_v5 }
 0x139   :  { %v378_v6 = vpop.f32.mrf.mxu0  ;;  %v413_v7 = vpop.f32.mrf.mxu1 }
 0x13a   :  { %631 = vst.msk [vmem:[%s1110_s3 + $0x20] sm:$0xff] %vm626_vm2, %v378_v6 }
 0x13b   :  { %636 = vst.msk [vmem:[%s1110_s3 + $0x48] sm:$0xff] %vm626_vm2, %v413_v7 }
 0x13e   :  { %v445_v8 = vpop.f32.mrf.mxu2  ;;  %v480_v9 = vpop.f32.mrf.mxu3 }
 0x13f   :  { %640 = vst.msk [vmem:[%s1110_s3 + $0x68] sm:$0xff] %vm626_vm2, %v445_v8 }
 0x140   :  { %645 = vst.msk [vmem:[%s1110_s3 + $0x90] sm:$0xff] %vm626_vm2, %v480_v9 }
 0x141   :  { %v506_v10 = vpop.f32.mrf.mxu0  ;;  %v541_v11 = vpop.f32.mrf.mxu1 }
 0x142   :  { %647 = vst.msk [vmem:[%s1110_s3 + $0xa0] sm:$0xff] %vm626_vm2, %v506_v10 }
 0x143   :  { %652 = vst.msk [vmem:[%s1110_s3 + $0xc8] sm:$0xff] %vm626_vm2, %v541_v11 }
 0x146   :  { %v448_v12 = vpop.f32.mrf.mxu2  ;;  %v483_v13 = vpop.f32.mrf.mxu3 }
 0x147   :  { %641 = vst.msk [vmem:[%s1110_s3 + $0x70] sm:$0xff] %vm626_vm2, %v448_v12 }
 0x148   :  { %646 = vst.msk [vmem:[%s1110_s3 + $0x98] sm:$0xff] %vm626_vm2, %v483_v13 }
 0x149   :  { %v509_v14 = vpop.f32.mrf.mxu0  ;;  %v544_v15 = vpop.f32.mrf.mxu1 }
 0x14a   :  { %648 = vst.msk [vmem:[%s1110_s3 + $0xa8] sm:$0xff] %vm626_vm2, %v509_v14 }
 0x14b   :  { %653 = vst.msk [vmem:[%s1110_s3 + $0xd0] sm:$0xff] %vm626_vm2, %v544_v15 }
 0x14e   :  { %v576_v16 = vpop.f32.mrf.mxu2  ;;  %v611_v17 = vpop.f32.mrf.mxu3 }
 0x14f   :  { %657 = vst.msk [vmem:[%s1110_s3 + $0xf0] sm:$0xff] %vm626_vm2, %v576_v16 }
 0x150   :  { %662 = vst.msk [vmem:[%s1110_s3 + $0x118] sm:$0xff] %vm626_vm2, %v611_v17 }
 0x151   :  { %v512_v18 = vpop.f32.mrf.mxu0  ;;  %v547_v19 = vpop.f32.mrf.mxu1 }
 0x152   :  { %649 = vst.msk [vmem:[%s1110_s3 + $0xb0] sm:$0xff] %vm626_vm2, %v512_v18 }
 0x153   :  { %654 = vst.msk [vmem:[%s1110_s3 + $0xd8] sm:$0xff] %vm626_vm2, %v547_v19 }
 0x156   :  { %v579_v20 = vpop.f32.mrf.mxu2  ;;  %v614_v21 = vpop.f32.mrf.mxu3 }
 0x157   :  { %658 = vst.msk [vmem:[%s1110_s3 + $0xf8] sm:$0xff] %vm626_vm2, %v579_v20 }
 0x158   :  { %663 = vst.msk [vmem:[%s1110_s3 + $0x120] sm:$0xff] %vm626_vm2, %v614_v21 }
 0x159   :  { %v515_v22 = vpop.f32.mrf.mxu0  ;;  %v550_v23 = vpop.f32.mrf.mxu1 }
 0x15a   :  { %650 = vst.msk [vmem:[%s1110_s3 + $0xb8] sm:$0xff] %vm626_vm2, %v515_v22 }
 0x15b   :  { %655 = vst.msk [vmem:[%s1110_s3 + $0xe0] sm:$0xff] %vm626_vm2, %v550_v23 }
 0x15e   :  { %v582_v24 = vpop.f32.mrf.mxu2  ;;  %v617_v25 = vpop.f32.mrf.mxu3 }
 0x15f   :  { %659 = vst.msk [vmem:[%s1110_s3 + $0x100] sm:$0xff] %vm626_vm2, %v582_v24 }
 0x160   :  { %664 = vst.msk [vmem:[%s1110_s3 + $0x128] sm:$0xff] %vm626_vm2, %v617_v25 }
 0x161   :  { %v518_v26 = vpop.f32.mrf.mxu0  ;;  %v553_v27 = vpop.f32.mrf.mxu1 }
 0x162   :  { %651 = vst.msk [vmem:[%s1110_s3 + $0xc0] sm:$0xff] %vm626_vm2, %v518_v26 }
 0x163   :  { %656 = vst.msk [vmem:[%s1110_s3 + $0xe8] sm:$0xff] %vm626_vm2, %v553_v27 }
 0x166   :  { %v585_v28 = vpop.f32.mrf.mxu2  ;;  %v620_v29 = vpop.f32.mrf.mxu3 }
 0x167   :  { %660 = vst.msk [vmem:[%s1110_s3 + $0x108] sm:$0xff] %vm626_vm2, %v585_v28 }
 0x168   :  { %665 = vst.msk [vmem:[%s1110_s3 + $0x130] sm:$0xff] %vm626_vm2, %v620_v29 }
 0x16e   :  { %v588_v30 = vpop.f32.mrf.mxu2  ;;  %v623_v31 = vpop.f32.mrf.mxu3 }
 0x16f   :  { %661 = vst.msk [vmem:[%s1110_s3 + $0x110] sm:$0xff] %vm626_vm2, %v588_v30 }
 0x170   :  { %666 = vst.msk [vmem:[%s1110_s3 + $0x138] sm:$0xff] %vm626_vm2, %v623_v31 }

</bundles_post_ra>
